<compile_context>
chip_gen: v7x
topology: tpu7x:2x2x1
jax: 0.10.0
libtpu: 0.0.40
codegen_flags: <defaults>
</compile_context>

<pallas_src>
import functools

import jax
import jax.numpy as jnp
from jax.experimental import pallas as pl
from jax.experimental.pallas import tpu as pltpu


def _cdiv(a, b):
    return -(-a // b)


def _pad_channels_kernel(x_ref, o_ref, *, lo, hi):
    # x_ref block : (bb, c     * hw)   -- lane-dense flattened (channel, spatial)
    # o_ref block : (bb, c_out * hw)
    # The channel zero-pad is the contiguous lane prefix [0, lo) and suffix
    # [hi, end); three direct sub-stores, no concatenate temp.
    bb = x_ref.shape[0]
    width = o_ref.shape[1]
    if lo > 0:
        o_ref[:, :lo] = jnp.zeros((bb, lo), o_ref.dtype)
    o_ref[:, lo:hi] = x_ref[...]
    if hi < width:
        o_ref[:, hi:] = jnp.zeros((bb, width - hi), o_ref.dtype)


def _choose_batch_block(b, bytes_per_row, target_step_bytes=12 * 1024 * 1024):
    """Batch rows per grid step.

    Big enough (~12 MiB in+out per step) to amortize the ~0.35us/step grid
    overhead, small enough that double-buffered in+out blocks stay well under
    the VMEM limit on v5e/v6e/v7x.  Non-divisible batches use a ragged (cdiv)
    last block instead of shrinking the block size, and the step count is
    nudged to be even (when possible) so v7x's two TensorCores stay balanced
    on the 'parallel' batch axis.
    """
    bb = max(1, min(b, target_step_bytes // max(1, bytes_per_row)))
    steps = _cdiv(b, bb)
    if steps > 1 and steps % 2:              # best-effort even step count (v7x)
        bb = _cdiv(b, steps + 1)
        steps = _cdiv(b, bb)
    return bb, steps


@functools.partial(jax.jit, static_argnames=("pad",))
def lambda_layer(x_nchw, *, pad):
    """Equivalent of LambdaLayer(lambda x: F.pad(x[:, :, ::2, ::2],
                                                 (0,0,0,0,pad,pad), 'constant', 0))."""
    b, c, h, w = x_nchw.shape
    h_out = (h + 1) // 2
    w_out = (w + 1) // 2
    hw = h_out * w_out
    c_out = c + 2 * pad

    # Stride-2 spatial subsample as a native XLA strided slice; offered to XLA
    # for fusion into the pallas operand via allow_input_fusion below, so the
    # kernel (and ideally the DMA) never touches discarded rows/columns.
    x_sub = x_nchw[:, :, ::2, ::2]                    # (b, c, h_out, w_out)
    # Lane-dense flattening (free row-major reshape): last dim c*hw is a
    # multiple of 128 for the real shortcut shapes, and in any case equals the
    # full array dim, which is always a legal block width.
    x_flat = x_sub.reshape(b, c * hw)

    itemsize = jnp.dtype(x_nchw.dtype).itemsize
    bytes_per_row = (c + c_out) * hw * itemsize       # in + out bytes per batch row
    bb, steps = _choose_batch_block(b, bytes_per_row)

    kernel = functools.partial(_pad_channels_kernel,
                               lo=pad * hw, hi=(pad + c) * hw)

    out = pl.pallas_call(
        kernel,
        out_shape=jax.ShapeDtypeStruct((b, c_out * hw), x_nchw.dtype),
        grid_spec=pltpu.PrefetchScalarGridSpec(
            num_scalar_prefetch=0,
            grid=(steps,),
            in_specs=[pl.BlockSpec((bb, c * hw), lambda i: (i, 0))],
            out_specs=pl.BlockSpec((bb, c_out * hw), lambda i: (i, 0)),
        ),
        compiler_params=pltpu.CompilerParams(
            dimension_semantics=("parallel",),
            vmem_limit_bytes=40 * 1024 * 1024,
            allow_input_fusion=[True],
        ),
    )(x_flat)

    return out.reshape(b, c_out, h_out, w_out)        # free row-major reshape


if __name__ == "__main__":
    key = jax.random.PRNGKey(0)
    B, C, H, W = 2, 4, 16, 16
    planes = 2 * C                    # option-A shortcut doubles the channel count
    pad = planes // 4                 # zero-pad `pad` channels on each side
    x = jax.random.normal(key, (B, C, H, W), dtype=jnp.float32)

    out = jax.block_until_ready(lambda_layer(x, pad=pad))

    # pure-JAX reference of the PyTorch lambda
    ref = jnp.pad(x[:, :, ::2, ::2], ((0, 0), (pad, pad), (0, 0), (0, 0)))
    assert out.shape == ref.shape, (out.shape, ref.shape)
    assert out.dtype == ref.dtype
    assert jnp.allclose(out, ref), "kernel output mismatch vs reference"

    print("KERNEL_OK")
</pallas_src>

<mosaic_0001>
module attributes {stable_mosaic.version = 11 : i64} {
  func.func @_pad_channels_kernel(%arg0: i32, %arg1: memref<2x256xf32, #tpu.memory_space<vmem>>, %arg2: memref<2x512xf32, #tpu.memory_space<vmem>>) attributes {dimension_semantics = [#tpu.dimension_semantics<parallel>], iteration_bounds = array<i64: 1>, scalar_prefetch = 0 : i64, scratch_operands = 0 : i64, tpu.core_type = #tpu.core_type<tc>, window_params = [{transform_indices = @transform_0, window_bounds = array<i64: 2, 256>}, {transform_indices = @transform_1, window_bounds = array<i64: 2, 512>}]} {
    %cst = arith.constant 0.000000e+00 : f32
    %0 = vector.broadcast %cst : f32 to vector<2x128xf32>
    %c0 = arith.constant 0 : index
    %c0_0 = arith.constant 0 : index
    %1 = vector.load %arg2[%c0, %c0_0] : memref<2x512xf32, #tpu.memory_space<vmem>>, vector<2x128xf32>
    tpu.vector_store %arg2[%c0, %c0_0], %0 {strides = array<i32>} : memref<2x512xf32, #tpu.memory_space<vmem>>, vector<2x128xf32>,
    %c0_1 = arith.constant 0 : index
    %c0_2 = arith.constant 0 : index
    %2 = vector.load %arg1[%c0_1, %c0_2] : memref<2x256xf32, #tpu.memory_space<vmem>>, vector<2x256xf32>
    %c0_3 = arith.constant 0 : index
    %c128 = arith.constant 128 : index
    %3 = vector.load %arg2[%c0_3, %c128] : memref<2x512xf32, #tpu.memory_space<vmem>>, vector<2x256xf32>
    tpu.vector_store %arg2[%c0_3, %c128], %2 {strides = array<i32>} : memref<2x512xf32, #tpu.memory_space<vmem>>, vector<2x256xf32>,
    %cst_4 = arith.constant 0.000000e+00 : f32
    %4 = vector.broadcast %cst_4 : f32 to vector<2x128xf32>
    %c0_5 = arith.constant 0 : index
    %c384 = arith.constant 384 : index
    %5 = vector.load %arg2[%c0_5, %c384] : memref<2x512xf32, #tpu.memory_space<vmem>>, vector<2x128xf32>
    tpu.vector_store %arg2[%c0_5, %c384], %4 {strides = array<i32>} : memref<2x512xf32, #tpu.memory_space<vmem>>, vector<2x128xf32>,
    return
  }
  func.func @transform_0(%arg0: i32) -> (i32, i32) {
    %c0_i32 = arith.constant 0 : i32
    %c0_i32_0 = arith.constant 0 : i32
    return %arg0, %c0_i32 : i32, i32
  }
  func.func @transform_1(%arg0: i32) -> (i32, i32) {
    %c0_i32 = arith.constant 0 : i32
    %c0_i32_0 = arith.constant 0 : i32
    return %arg0, %c0_i32 : i32, i32
  }
}

</mosaic_0001>

<bundles_post_ra>
// kernel: lambda_layer.1
= control target key start
LH: loop header
LB: loop body
LE: loop exit
PB: predicated region body
PF: predicated region fallthrough
CT: control target
= control target key end

     0   :  { %v17_v0 = vmov 0.0   ;;  %s40_s1 = inlined_call_operand.vmem [shape: f32[2,512], index: 1, kind: output, shape index: {}]   ;;  %s41_s0 = inlined_call_operand.vmem [shape: f32[2,256], index: 0, kind: input, shape index: {}]  }
   0x1   :  { %8 = vst [vmem:[%s40_s1] sm:$0x3] %v17_v0  ;;  %11 = vst [vmem:[%s40_s1 + $0x6] sm:$0x3] %v17_v0  ;;  %v9_v1 = vld [vmem:[%s41_s0] sm:$0xf] }
   0x2   :  { %10 = vst [vmem:[%s40_s1 + $0x2] sm:$0xf] %v9_v1 }

</bundles_post_ra>
